<compile_context>
chip_gen: v7x
topology: tpu7x:2x2x1
jax: 0.10.0
libtpu: 0.0.40
codegen_flags: <defaults>
</compile_context>

<pallas_src>
import functools

import jax
import jax.numpy as jnp
from jax import lax
from jax.experimental import pallas as pl
from jax.experimental.pallas import tpu as pltpu


def _l1_partial_kernel(x_ref, t_ref, o_ref, *, tile_rows, lanes, needs_mask,
                       valid_rows_last):
    """Accumulate sum(|x - t|) into a VMEM-resident (1, 8, lanes) f32 partial."""
    p = pl.program_id(0)          # parallel split (megacore sharding on v7x)
    i = pl.program_id(1)          # sequential reduction axis

    @pl.when(i == 0)
    def _():
        o_ref[...] = jnp.zeros_like(o_ref)

    # |x - t| in the native input dtype (bf16 stays packed [16,128] on the VPU);
    # cast to f32 only at the accumulate step.
    diff = jnp.abs(x_ref[...] - t_ref[...])

    def accumulate(d):
        # (tile_rows, lanes) -> (tile_rows//8, 8, lanes) -> (8, lanes):
        # vreg-aligned groups, pure VPU adds, f32 accumulation.
        part = d.astype(jnp.float32).reshape(tile_rows // 8, 8, lanes).sum(axis=0)
        o_ref[0] += part

    if needs_mask:
        # Only the very last logical block can be partial; gate the mask work so
        # interior blocks never pay the iota/compare/select VALU cost.
        is_last = jnp.logical_and(p == pl.num_programs(0) - 1,
                                  i == pl.num_programs(1) - 1)

        @pl.when(is_last)
        def _():
            keep = lax.broadcasted_iota(jnp.int32, diff.shape, 0) < valid_rows_last
            accumulate(jnp.where(keep, diff, 0))

        @pl.when(jnp.logical_not(is_last))
        def _():
            accumulate(diff)
    else:
        accumulate(diff)


@functools.partial(jax.jit, static_argnames=("tile_rows", "lanes"))
def l1_loss(x, t, *, tile_rows=8192, lanes=128):
    """Equivalent of torch.nn.functional.l1_loss(x, t) (mean reduction)."""
    assert x.shape == t.shape, "l1_loss expects matching shapes"
    n = x.size

    # Compute / output dtype = promoted floating dtype of the inputs (torch parity).
    out_dtype = jnp.promote_types(x.dtype, t.dtype)
    if not jnp.issubdtype(out_dtype, jnp.floating):
        out_dtype = jnp.float32
    if x.dtype != out_dtype:
        x = x.astype(out_dtype)
    if t.dtype != out_dtype:
        t = t.astype(out_dtype)

    rem = n % lanes
    rows0 = n // lanes
    if rem == 0 and rows0 >= 8:
        # Zero-copy fast path: flat buffer reshapes to a lane-dense slab.
        xf = x.reshape(rows0, lanes)
        tf = t.reshape(rows0, lanes)
        rows = rows0
    else:
        # Ragged / tiny path: pad the flat view up to a multiple of 8*lanes so
        # rows is vreg-aligned; zero pads contribute |0 - 0| = 0.
        # TODO(synk): a fully copy-free ragged path needs a manual-DMA kernel
        # over the raw flat HBM buffer; not worth it for this loss.
        quantum = 8 * lanes
        pad = (-n) % quantum
        xf = jnp.pad(x.reshape(-1), (0, pad)).reshape(-1, lanes)
        tf = jnp.pad(t.reshape(-1), (0, pad)).reshape(-1, lanes)
        rows = (n + pad) // lanes

    # Largest multiple-of-8 tile <= min(requested, rows).  Default 8192 rows x
    # 128 lanes = 4 MiB (f32) per operand per pipeline buffer.
    tile_rows = max(8, (min(tile_rows, rows) // 8) * 8)
    nblocks = pl.cdiv(rows, tile_rows)

    # 2-way split only when it divides the block count exactly: harmless on
    # single-TC chips (same blocks, same DMAs), lets the megacore shard on v7x,
    # and never issues a wasted clamped-duplicate tile.
    nsplit = 2 if (nblocks >= 2 and nblocks % 2 == 0) else 1
    bpc = nblocks // nsplit

    needs_mask = (rows % tile_rows) != 0            # only last block is partial
    valid_rows_last = rows - (nblocks - 1) * tile_rows

    kernel = functools.partial(
        _l1_partial_kernel, tile_rows=tile_rows, lanes=lanes,
        needs_mask=needs_mask, valid_rows_last=valid_rows_last)

    def in_map(p, i):
        return (p * bpc + i, 0)

    itemsize = jnp.dtype(out_dtype).itemsize
    in_bytes_db = 2 * 2 * tile_rows * lanes * itemsize      # 2 operands x 2 bufs
    # Explicit scoped-VMEM budget: double-buffered inputs + elementwise/cast
    # intermediates + slack.  Stays within physical VMEM on v5e/v6e (128 MiB)
    # and v7x (64 MiB per TensorCore).
    vmem_limit = int(min(48 << 20,
                         max(32 << 20,
                             in_bytes_db + 4 * tile_rows * lanes * 4 + (4 << 20))))

    cost = pl.CostEstimate(
        flops=3 * rows * lanes,                              # sub + abs + add
        transcendentals=0,
        bytes_accessed=2 * rows * lanes * itemsize + nsplit * 8 * lanes * 4)

    partials = pl.pallas_call(
        kernel,
        out_shape=jax.ShapeDtypeStruct((nsplit, 8, lanes), jnp.float32),
        grid_spec=pltpu.PrefetchScalarGridSpec(
            num_scalar_prefetch=0,
            grid=(nsplit, bpc),
            in_specs=[
                pl.BlockSpec((tile_rows, lanes), in_map),
                pl.BlockSpec((tile_rows, lanes), in_map),
            ],
            out_specs=pl.BlockSpec((1, 8, lanes), lambda p, i: (p, 0, 0)),
        ),
        compiler_params=pltpu.CompilerParams(
            # TODO(synk): on v7x, switch to (pltpu.CORE_PARALLEL, pltpu.ARBITRARY)
            # if profiling shows "parallel" is not sharded across the 2 TCs.
            dimension_semantics=("parallel", "arbitrary"),
            vmem_limit_bytes=vmem_limit,
        ),
        cost_estimate=cost,
    )(xf, tf)

    # Tiny (nsplit, 8, lanes) partial collapse + exact mean (1/n in Python
    # double, so n > 2^24 introduces no bias); cast to the input dtype.
    total = jnp.sum(partials, dtype=jnp.float32)
    return (total * (1.0 / n)).astype(out_dtype)


if __name__ == "__main__":
    key = jax.random.PRNGKey(0)
    k1, k2 = jax.random.split(key)

    # 1) Basic NCHW-like case, n % 128 == 0 -> zero-copy fast path, single block.
    x = jax.random.normal(k1, (2, 4, 16, 16), dtype=jnp.float32)
    t = jax.random.normal(k2, (2, 4, 16, 16), dtype=jnp.float32)
    out = l1_loss(x, t)
    jax.block_until_ready(out)
    ref = jnp.mean(jnp.abs(x - t))
    assert jnp.allclose(out, ref, rtol=1e-6, atol=1e-6), (out, ref)

    # 2) Ragged size (n % 128 != 0) -> minimal tail-pad path.
    x2 = jax.random.normal(k1, (3, 4, 33, 33), dtype=jnp.float32)
    t2 = jax.random.normal(k2, (3, 4, 33, 33), dtype=jnp.float32)
    out2 = l1_loss(x2, t2)
    jax.block_until_ready(out2)
    ref2 = jnp.mean(jnp.abs(x2 - t2))
    assert jnp.allclose(out2, ref2, rtol=1e-6, atol=1e-6), (out2, ref2)

    # 3) Partial trailing block + even 2-way split (gated mask path):
    #    rows=10, tile_rows=8 -> nblocks=2, nsplit=2, last block masked to 2 rows.
    x3 = jax.random.normal(k1, (10, 128), dtype=jnp.float32)
    t3 = jax.random.normal(k2, (10, 128), dtype=jnp.float32)
    out3 = l1_loss(x3, t3, tile_rows=8)
    jax.block_until_ready(out3)
    ref3 = jnp.mean(jnp.abs(x3 - t3))
    assert jnp.allclose(out3, ref3, rtol=1e-6, atol=1e-6), (out3, ref3)

    # 4) Odd block count -> nsplit=1 (no clamped duplicate tile):
    #    rows=24, tile_rows=8 -> nblocks=3.
    x4 = jax.random.normal(k1, (3, 4, 16, 16), dtype=jnp.float32)
    t4 = jax.random.normal(k2, (3, 4, 16, 16), dtype=jnp.float32)
    out4 = l1_loss(x4, t4, tile_rows=8)
    jax.block_until_ready(out4)
    ref4 = jnp.mean(jnp.abs(x4 - t4))
    assert jnp.allclose(out4, ref4, rtol=1e-6, atol=1e-6), (out4, ref4)

    # 5) bf16 inputs: native-dtype VPU elementwise + f32 accumulate, bf16 result.
    xb = jax.random.normal(k1, (2, 4, 16, 16), dtype=jnp.bfloat16)
    tb = jax.random.normal(k2, (2, 4, 16, 16), dtype=jnp.bfloat16)
    outb = l1_loss(xb, tb)
    jax.block_until_ready(outb)
    refb = jnp.mean(jnp.abs(xb.astype(jnp.float32) - tb.astype(jnp.float32)))
    assert abs(float(outb) - float(refb)) <= 2e-2 * float(refb) + 1e-3, (outb, refb)

    print("KERNEL_OK")
</pallas_src>

<mosaic_0001>
module attributes {stable_mosaic.version = 11 : i64} {
  func.func @_l1_partial_kernel(%arg0: i32, %arg1: i32, %arg2: memref<16x128xf32, #tpu.memory_space<vmem>>, %arg3: memref<16x128xf32, #tpu.memory_space<vmem>>, %arg4: memref<1x8x128xf32, #tpu.memory_space<vmem>>) attributes {dimension_semantics = [#tpu.dimension_semantics<parallel>, #tpu.dimension_semantics<arbitrary>], iteration_bounds = array<i64: 1, 1>, scalar_prefetch = 0 : i64, scratch_operands = 0 : i64, tpu.core_type = #tpu.core_type<tc>, window_params = [{transform_indices = @transform_0, window_bounds = array<i64: 16, 128>}, {transform_indices = @transform_1, window_bounds = array<i64: 16, 128>}, {transform_indices = @transform_2, window_bounds = array<i64: 1, 8, 128>}]} {
    %c0_i32 = arith.constant 0 : i32
    %0 = arith.cmpi eq, %arg1, %c0_i32 : i32
    %1 = arith.extui %0 : i1 to i32
    %c0_i32_0 = arith.constant 0 : i32
    %2 = arith.cmpi ne, %1, %c0_i32_0 : i32
    scf.if %2 {
      %cst_10 = arith.constant 0.000000e+00 : f32
      %15 = vector.broadcast %cst_10 : f32 to vector<1x8x128xf32>
      %c0_11 = arith.constant 0 : index
      %c0_12 = arith.constant 0 : index
      %c0_13 = arith.constant 0 : index
      %16 = vector.load %arg4[%c0_11, %c0_12, %c0_13] : memref<1x8x128xf32, #tpu.memory_space<vmem>>, vector<1x8x128xf32>
      tpu.vector_store %arg4[%c0_11, %c0_12, %c0_13], %15 {strides = array<i32>} : memref<1x8x128xf32, #tpu.memory_space<vmem>>, vector<1x8x128xf32>,
    } else {
    }
    %c0 = arith.constant 0 : index
    %c0_1 = arith.constant 0 : index
    %3 = vector.load %arg2[%c0, %c0_1] : memref<16x128xf32, #tpu.memory_space<vmem>>, vector<16x128xf32>
    %c0_2 = arith.constant 0 : index
    %c0_3 = arith.constant 0 : index
    %4 = vector.load %arg3[%c0_2, %c0_3] : memref<16x128xf32, #tpu.memory_space<vmem>>, vector<16x128xf32>
    %5 = arith.subf %3, %4 : vector<16x128xf32>
    %6 = math.absf %5 : vector<16x128xf32>
    %7 = vector.shape_cast %6 : vector<16x128xf32> to vector<2x8x128xf32>
    %cst = arith.constant dense<0.000000e+00> : vector<8x128xf32>
    %8 = vector.multi_reduction <add>, %7, %cst [0] : vector<2x8x128xf32> to vector<8x128xf32>
    %c0_4 = arith.constant 0 : index
    %c0_5 = arith.constant 0 : index
    %c0_6 = arith.constant 0 : index
    %9 = vector.load %arg4[%c0_4, %c0_5, %c0_6] : memref<1x8x128xf32, #tpu.memory_space<vmem>>, vector<1x8x128xf32>
    %10 = vector.shape_cast %9 : vector<1x8x128xf32> to vector<8x128xf32>
    %11 = arith.addf %10, %8 : vector<8x128xf32>
    %c0_7 = arith.constant 0 : index
    %c0_8 = arith.constant 0 : index
    %c0_9 = arith.constant 0 : index
    %12 = vector.load %arg4[%c0_7, %c0_8, %c0_9] : memref<1x8x128xf32, #tpu.memory_space<vmem>>, vector<1x8x128xf32>
    %13 = vector.shape_cast %12 : vector<1x8x128xf32> to vector<8x128xf32>
    %14 = vector.shape_cast %11 : vector<8x128xf32> to vector<1x8x128xf32>
    tpu.vector_store %arg4[%c0_7, %c0_8, %c0_9], %14 {strides = array<i32>} : memref<1x8x128xf32, #tpu.memory_space<vmem>>, vector<1x8x128xf32>,
    return
  }
  func.func @transform_0(%arg0: i32, %arg1: i32) -> (i32, i32) {
    %c1_i32 = arith.constant 1 : i32
    %0 = arith.muli %arg0, %c1_i32 : i32
    %1 = arith.addi %0, %arg1 : i32
    %c0_i32 = arith.constant 0 : i32
    %c0_i32_0 = arith.constant 0 : i32
    return %1, %c0_i32 : i32, i32
  }
  func.func @transform_1(%arg0: i32, %arg1: i32) -> (i32, i32) {
    %c1_i32 = arith.constant 1 : i32
    %0 = arith.muli %arg0, %c1_i32 : i32
    %1 = arith.addi %0, %arg1 : i32
    %c0_i32 = arith.constant 0 : i32
    %c0_i32_0 = arith.constant 0 : i32
    return %1, %c0_i32 : i32, i32
  }
  func.func @transform_2(%arg0: i32, %arg1: i32) -> (i32, i32, i32) {
    %c0_i32 = arith.constant 0 : i32
    %c0_i32_0 = arith.constant 0 : i32
    %c0_i32_1 = arith.constant 0 : i32
    return %arg0, %c0_i32, %c0_i32_0 : i32, i32, i32
  }
}

</mosaic_0001>

<bundles_post_ra>
// kernel: l1_loss.1
= control target key start
LH: loop header
LB: loop body
LE: loop exit
PB: predicated region body
PF: predicated region fallthrough
CT: control target
= control target key end

     0   :  { %s119_s0 = inlined_call_operand.vmem [shape: f32[16,128], index: 0, kind: input, shape index: {}]   ;;  %s120_s1 = inlined_call_operand.vmem [shape: f32[16,128], index: 1, kind: input, shape index: {}]   ;;  %s121_s2 = inlined_call_operand.vmem [shape: f32[1,8,128], index: 2, kind: output, shape index: {}]  }
   0x1   :  { %v60_v0 = vld [vmem:[%s119_s0] sm:$0xff]  ;;  %v61_v1 = vld [vmem:[%s119_s0 + $0x8] sm:$0xff] }
   0x2   :  { %v62_v2 = vld [vmem:[%s120_s1] sm:$0xff]  ;;  %v63_v3 = vld [vmem:[%s120_s1 + $0x8] sm:$0xff] }
   0x3   :  { %v64_v4 = vsub.f32 %v60_v0, %v62_v2  ;;  %v65_v5 = vsub.f32 %v61_v1, %v63_v3 }
   0x5   :  { %v66_v6 = vand.u32 2147483647, %v64_v4  ;;  %v67_v7 = vand.u32 2147483647, %v65_v5 }
   0x7   :  { %v68_v8 = vadd.f32 %v67_v7, %v66_v6 }
   0x9   :  { %71 = vst [vmem:[%s121_s2] sm:$0xff] %v68_v8 }

</bundles_post_ra>
